<compile_context>
chip_gen: v7x
topology: tpu7x:2x2x1
jax: 0.10.0
libtpu: 0.0.40
codegen_flags: <defaults>
</compile_context>

<pallas_src>
import functools

import jax
import jax.numpy as jnp
from jax import lax
from jax.experimental import pallas as pl
from jax.experimental.pallas import tpu as pltpu


def _round_up(x, m):
    return ((x + m - 1) // m) * m


def _tensorcores_per_chip():
    """v7x packs 2 TensorCores per chip ("parallel" grid axes shard across them);
    v5e/v6e have 1.  Default to 1 if detection fails."""
    try:
        kind = jax.devices()[0].device_kind.lower()
    except Exception:
        return 1
    if "v7" in kind or "7x" in kind:
        return 2
    return 1


def _rnn_chunk_kernel(xs_ref, h0_ref, w_xh_ref, w_hh_ref, b_ih_ref,
                      w_ho_ref, b_ho_ref, out_ref, hT_ref,
                      h_scr, pre_scr, *, T, Tc):
    """One (batch-tile, time-chunk) grid point; runs Tc recurrent steps in-kernel.

    Grid = (n_tiles, n_chunks):
      axis 0 ("parallel")  : batch tiles (megacore sharding on dual-TC chips)
      axis 1 ("arbitrary") : time chunks; h carried in VMEM scratch, weights
                             resident, outputs written only on the final chunk.
    """
    c = pl.program_id(1)
    n_chunks = pl.num_programs(1)
    bt = h_scr.shape[0]

    @pl.when(c == 0)
    def _():
        h_scr[...] = h0_ref[...].astype(jnp.float32)

    # ---- chunk-wide input projection (hoisted off the serial chain) --------
    # pre[t*bt + b, :] = xs[t, b, :] @ W_x + b_ih  for all Tc steps of the chunk.
    # obs_dim is tiny (2), so two chunk-wide VPU broadcast-FMAs; runs once per
    # chunk, overlapping freely with the recurrent chain of the previous chunk.
    x2d = xs_ref[...].astype(jnp.float32)                       # (Tc*bt, obs_dim)
    w_xh = w_xh_ref[...].astype(jnp.float32)                    # (obs_dim, nhidden)
    obs_dim = x2d.shape[1]
    pre = x2d[:, 0:1] * w_xh[0:1, :]
    for k in range(1, obs_dim):                                 # static unroll (obs_dim = 2)
        pre = pre + x2d[:, k:k + 1] * w_xh[k:k + 1, :]
    pre = pre + b_ih_ref[...].astype(jnp.float32)               # (1, nhidden) broadcast
    pre_scr[...] = pre                                          # (Tc*bt, nhidden) f32

    # ---- serial recurrence: tanh(h @ W_hh + pre[t]) only ---------------------
    w_hh = w_hh_ref[...]                                        # resident, (nh, nh)
    w_dtype = w_hh.dtype
    ragged = (T % Tc) != 0                                      # static Python bool

    def step(t, h):
        off = pl.multiple_of(t * bt, 8)
        pre_t = pre_scr[pl.ds(off, bt), :]                      # (bt, nhidden) f32
        # NOTE: h carried in f32 (PyTorch parity, v5e-safe).  With bf16 weights
        # a bf16 h-carry would shave one cast per step; kept f32 for exactness.
        h_new = jnp.tanh(jnp.dot(h.astype(w_dtype), w_hh,
                                 preferred_element_type=jnp.float32) + pre_t)
        if ragged:
            h_new = jnp.where(c * Tc + t < T, h_new, h)         # mask padded tail steps
        return h_new

    h = lax.fori_loop(0, Tc, step, h_scr[...])
    h_scr[...] = h

    @pl.when(c == n_chunks - 1)
    def _():
        hT_ref[...] = h.astype(hT_ref.dtype)
        out = jnp.dot(h.astype(w_ho_ref.dtype), w_ho_ref[...],
                      preferred_element_type=jnp.float32)
        out_ref[...] = (out + b_ho_ref[...].astype(jnp.float32)).astype(out_ref.dtype)


def recognition_rnn_sequence(xs, h0, params, *, batch_tile=None, time_chunk=None):
    """Run all T RNN steps in one pallas_call.

    xs: (T, B, obs_dim), h0: (B, nhidden).
    Returns (out_T, h_T): the h2o output of the final step and the final hidden
    state (what the ECG latent-ODE training loop consumes).
    """
    T, B, obs_dim = xs.shape
    nhidden = h0.shape[1]
    out_dim = params["w_ho"].shape[1]

    # Batch tile: split evenly across TensorCores (v7x: 2, else 1); single large
    # tile on single-TC chips so the serial time loop runs once.  Cap to bound
    # vreg pressure / VMEM.
    if batch_tile is None:
        n_core = _tensorcores_per_chip()
        bt = _round_up(-(-B // n_core), 8)
        bt = _round_up(min(bt, 256), 8)
    else:
        bt = _round_up(min(batch_tile, _round_up(B, 8)), 8)
    pB = _round_up(B, bt)
    n_tiles = pB // bt

    # Time chunk: biggest that keeps (xs double-buffer + pre scratch) modest in
    # VMEM (lane padding inflates both; keep Tc*bt rows <= 8192 -> ~12 MiB total).
    if time_chunk is None:
        Tc = max(1, min(T, 128, 8192 // bt))
    else:
        Tc = max(1, min(time_chunk, T))
    n_chunks = -(-T // Tc)
    pT = n_chunks * Tc

    # Pad, then repack xs so each (tile, chunk) is ONE contiguous slab:
    # (pT, pB, obs) -> (n_tiles, n_chunks, Tc*bt, obs); row t*bt + b of a slab is
    # xs[chunk*Tc + t, tile*bt + b, :].  One DMA per chunk instead of one per step.
    xs_p = jnp.pad(xs, ((0, pT - T), (0, pB - B), (0, 0)))
    h0_p = jnp.pad(h0, ((0, pB - B), (0, 0))) if pB != B else h0
    xs_r = xs_p.reshape(n_chunks, Tc, n_tiles, bt, obs_dim)
    xs_r = xs_r.transpose(2, 0, 1, 3, 4).reshape(n_tiles, n_chunks, Tc * bt, obs_dim)

    w_xh, w_hh, b_ih = params["w_xh"], params["w_hh"], params["b_ih"]
    w_ho, b_ho = params["w_ho"], params["b_ho"]

    kernel = functools.partial(_rnn_chunk_kernel, T=T, Tc=Tc)

    out, hT = pl.pallas_call(
        kernel,
        out_shape=(
            jax.ShapeDtypeStruct((pB, out_dim), jnp.float32),
            jax.ShapeDtypeStruct((pB, nhidden), jnp.float32),
        ),
        grid_spec=pltpu.PrefetchScalarGridSpec(
            num_scalar_prefetch=0,
            grid=(n_tiles, n_chunks),
            in_specs=[
                pl.BlockSpec((None, None, Tc * bt, obs_dim),
                             lambda i, c: (i, c, 0, 0)),          # xs chunk slab
                pl.BlockSpec((bt, nhidden), lambda i, c: (i, 0)), # h0
                pl.BlockSpec(w_xh.shape, lambda i, c: (0, 0)),    # W_x  (resident)
                pl.BlockSpec(w_hh.shape, lambda i, c: (0, 0)),    # W_h  (resident)
                pl.BlockSpec(b_ih.shape, lambda i, c: (0, 0)),    # b_ih (resident)
                pl.BlockSpec(w_ho.shape, lambda i, c: (0, 0)),    # W_o  (resident)
                pl.BlockSpec(b_ho.shape, lambda i, c: (0, 0)),    # b_ho (resident)
            ],
            out_specs=(
                pl.BlockSpec((bt, out_dim), lambda i, c: (i, 0)),  # written last chunk only
                pl.BlockSpec((bt, nhidden), lambda i, c: (i, 0)),  # written last chunk only
            ),
            scratch_shapes=[
                pltpu.VMEM((bt, nhidden), jnp.float32),            # carried hidden state
                pltpu.VMEM((Tc * bt, nhidden), jnp.float32),       # hoisted input projection
            ],
        ),
        compiler_params=pltpu.CompilerParams(
            dimension_semantics=("parallel", "arbitrary"),
            vmem_limit_bytes=40 * 1024 * 1024),
    )(xs_r, h0_p, w_xh, w_hh, b_ih, w_ho, b_ho)

    return out[:B], hT[:B]


def recognition_rnn_forward(x, h, params, **kwargs):
    """Exact RecognitionRNN.forward semantics: one step, returns (out, h_new).

    NOTE: for recurrent usage always call recognition_rnn_sequence on the whole
    sequence — calling this in a host-side loop pays full launch + weight-DMA
    cost for ~80K MACs of work per step.
    """
    return recognition_rnn_sequence(x[None], h, params, **kwargs)


def init_params(key, latent_dim=4, obs_dim=2, rnnhidden=25, dtype=jnp.float32):
    """Deterministic init mirroring nn.Linear's U(-1/sqrt(fan_in), 1/sqrt(fan_in)).

    i2h weight is stored transposed (in_features, out_features) and split into its
    x / h parts so the kernel never needs to concatenate."""
    k1, k2, k3, k4 = jax.random.split(key, 4)
    fan_i2h = obs_dim + rnnhidden
    bnd_i2h = 1.0 / jnp.sqrt(jnp.float32(fan_i2h))
    w_i2h = jax.random.uniform(k1, (fan_i2h, rnnhidden), jnp.float32, -bnd_i2h, bnd_i2h)
    b_i2h = jax.random.uniform(k2, (1, rnnhidden), jnp.float32, -bnd_i2h, bnd_i2h)

    fan_h2o = rnnhidden
    bnd_h2o = 1.0 / jnp.sqrt(jnp.float32(fan_h2o))
    w_h2o = jax.random.uniform(k3, (rnnhidden, latent_dim * 2), jnp.float32, -bnd_h2o, bnd_h2o)
    b_h2o = jax.random.uniform(k4, (1, latent_dim * 2), jnp.float32, -bnd_h2o, bnd_h2o)

    return {
        "w_xh": w_i2h[:obs_dim, :].astype(dtype),   # (obs_dim, nhidden)
        "w_hh": w_i2h[obs_dim:, :].astype(dtype),   # (nhidden, nhidden)
        "b_ih": b_i2h.astype(dtype),                # (1, nhidden)
        "w_ho": w_h2o.astype(dtype),                # (nhidden, 2*latent_dim)
        "b_ho": b_h2o.astype(dtype),                # (1, 2*latent_dim)
    }


# ----------------------------- pure-JAX references -----------------------------

def reference_step(x, h, params):
    w = jnp.concatenate([params["w_xh"], params["w_hh"]], axis=0).astype(jnp.float32)
    combined = jnp.concatenate([x, h], axis=1)
    h_new = jnp.tanh(combined @ w + params["b_ih"].astype(jnp.float32))
    out = h_new @ params["w_ho"].astype(jnp.float32) + params["b_ho"].astype(jnp.float32)
    return out, h_new


def reference_sequence(xs, h0, params):
    def step(h, x):
        out, h_new = reference_step(x, h, params)
        return h_new, out
    hT, outs = lax.scan(step, h0, xs)
    return outs[-1], hT


if __name__ == "__main__":
    latent_dim, obs_dim, rnnhidden, nbatch = 4, 2, 25, 2
    T = 8

    key = jax.random.PRNGKey(0)
    kp, kx, kxs, kxl, kxr = jax.random.split(key, 5)
    params = init_params(kp, latent_dim=latent_dim, obs_dim=obs_dim, rnnhidden=rnnhidden)

    # 1) Single step — exact RecognitionRNN.forward semantics at the module's sizes.
    x = jax.random.normal(kx, (nbatch, obs_dim), dtype=jnp.float32)
    h0 = jnp.zeros((nbatch, rnnhidden), dtype=jnp.float32)          # initHidden()
    out, h_new = recognition_rnn_forward(x, h0, params)
    jax.block_until_ready((out, h_new))
    out_r, h_r = reference_step(x, h0, params)
    assert out.shape == (nbatch, latent_dim * 2)
    assert h_new.shape == (nbatch, rnnhidden)
    assert jnp.allclose(out, out_r, atol=1e-5), "single-step out mismatch"
    assert jnp.allclose(h_new, h_r, atol=1e-5), "single-step h mismatch"

    # 2) Fused T-step sequence (in-kernel time loop), small batch.
    xs = jax.random.normal(kxs, (T, nbatch, obs_dim), dtype=jnp.float32)
    out_T, h_T = recognition_rnn_sequence(xs, h0, params)
    jax.block_until_ready((out_T, h_T))
    out_Tr, h_Tr = reference_sequence(xs, h0, params)
    assert jnp.allclose(out_T, out_Tr, atol=1e-4), "sequence out mismatch"
    assert jnp.allclose(h_T, h_Tr, atol=1e-4), "sequence h mismatch"

    # 3) Larger batch with automatic (generation-aware) tiling.
    Bbig = 160
    xs_big = jax.random.normal(kxl, (T, Bbig, obs_dim), dtype=jnp.float32)
    h0_big = jnp.zeros((Bbig, rnnhidden), dtype=jnp.float32)
    out_b, h_b = recognition_rnn_sequence(xs_big, h0_big, params)
    jax.block_until_ready((out_b, h_b))
    out_br, h_br = reference_sequence(xs_big, h0_big, params)
    assert jnp.allclose(out_b, out_br, atol=1e-4), "tiled-batch out mismatch"
    assert jnp.allclose(h_b, h_br, atol=1e-4), "tiled-batch h mismatch"

    # 4) Multi-chunk time loop with ragged tail + explicit multi-tile batch.
    Tlong = 37
    xs_long = jax.random.normal(kxr, (Tlong, Bbig, obs_dim), dtype=jnp.float32)
    out_l, h_l = recognition_rnn_sequence(xs_long, h0_big, params,
                                          batch_tile=64, time_chunk=8)
    jax.block_until_ready((out_l, h_l))
    out_lr, h_lr = reference_sequence(xs_long, h0_big, params)
    assert jnp.allclose(out_l, out_lr, atol=1e-3), "ragged/chunked out mismatch"
    assert jnp.allclose(h_l, h_lr, atol=1e-3), "ragged/chunked h mismatch"

    # 5) bf16 weights (v6e/v7x): MXU in bf16, f32 accumulation, f32 elementwise.
    params_bf16 = {k: v.astype(jnp.bfloat16) for k, v in params.items()}
    out_q, h_q = recognition_rnn_sequence(xs_big, h0_big, params_bf16)
    jax.block_until_ready((out_q, h_q))
    assert jnp.allclose(out_q, out_br, atol=1e-1), "bf16 out mismatch"
    assert jnp.allclose(h_q, h_br, atol=1e-1), "bf16 h mismatch"

    print("KERNEL_OK")
</pallas_src>

<mosaic_0001>
module attributes {stable_mosaic.version = 11 : i64} {
  func.func @_rnn_chunk_kernel(%arg0: i32, %arg1: i32, %arg2: memref<1x1x8x2xf32, #tpu.memory_space<vmem>>, %arg3: memref<8x25xf32, #tpu.memory_space<vmem>>, %arg4: memref<2x25xf32, #tpu.memory_space<vmem>>, %arg5: memref<25x25xf32, #tpu.memory_space<vmem>>, %arg6: memref<1x25xf32, #tpu.memory_space<vmem>>, %arg7: memref<25x8xf32, #tpu.memory_space<vmem>>, %arg8: memref<1x8xf32, #tpu.memory_space<vmem>>, %arg9: memref<8x8xf32, #tpu.memory_space<vmem>>, %arg10: memref<8x25xf32, #tpu.memory_space<vmem>>, %arg11: memref<8x25xf32, #tpu.memory_space<vmem>>, %arg12: memref<8x25xf32, #tpu.memory_space<vmem>>) attributes {dimension_semantics = [#tpu.dimension_semantics<parallel>, #tpu.dimension_semantics<arbitrary>], iteration_bounds = array<i64: 1, 1>, scalar_prefetch = 0 : i64, scratch_operands = 2 : i64, tpu.core_type = #tpu.core_type<tc>, window_params = [{transform_indices = @transform_0, window_bounds = array<i64: 1, 1, 8, 2>}, {transform_indices = @transform_1, window_bounds = array<i64: 8, 25>}, {pipeline_mode = #tpu.pipeline_mode<synchronous>, transform_indices = @transform_2, window_bounds = array<i64: 2, 25>}, {pipeline_mode = #tpu.pipeline_mode<synchronous>, transform_indices = @transform_3, window_bounds = array<i64: 25, 25>}, {pipeline_mode = #tpu.pipeline_mode<synchronous>, transform_indices = @transform_4, window_bounds = array<i64: 1, 25>}, {pipeline_mode = #tpu.pipeline_mode<synchronous>, transform_indices = @transform_5, window_bounds = array<i64: 25, 8>}, {pipeline_mode = #tpu.pipeline_mode<synchronous>, transform_indices = @transform_6, window_bounds = array<i64: 1, 8>}, {transform_indices = @transform_7, window_bounds = array<i64: 8, 8>}, {transform_indices = @transform_8, window_bounds = array<i64: 8, 25>}]} {
    %c0_i32 = arith.constant 0 : i32
    %0 = arith.cmpi eq, %arg1, %c0_i32 : i32
    %1 = arith.extui %0 : i1 to i32
    %c0_i32_0 = arith.constant 0 : i32
    %2 = arith.cmpi ne, %1, %c0_i32_0 : i32
    scf.if %2 {
      %c0_20 = arith.constant 0 : index
      %c0_21 = arith.constant 0 : index
      %34 = vector.load %arg3[%c0_20, %c0_21] : memref<8x25xf32, #tpu.memory_space<vmem>>, vector<8x25xf32>
      %c0_22 = arith.constant 0 : index
      %c0_23 = arith.constant 0 : index
      %35 = vector.load %arg11[%c0_22, %c0_23] : memref<8x25xf32, #tpu.memory_space<vmem>>, vector<8x25xf32>
      tpu.vector_store %arg11[%c0_22, %c0_23], %34 {strides = array<i32>} : memref<8x25xf32, #tpu.memory_space<vmem>>, vector<8x25xf32>,
    } else {
    }
    %c0 = arith.constant 0 : index
    %c0_1 = arith.constant 0 : index
    %c0_2 = arith.constant 0 : index
    %c0_3 = arith.constant 0 : index
    %3 = vector.load %arg2[%c0, %c0_1, %c0_2, %c0_3] : memref<1x1x8x2xf32, #tpu.memory_space<vmem>>, vector<1x1x8x2xf32>
    %4 = vector.shape_cast %3 : vector<1x1x8x2xf32> to vector<8x2xf32>
    %c0_4 = arith.constant 0 : index
    %c0_5 = arith.constant 0 : index
    %5 = vector.load %arg4[%c0_4, %c0_5] : memref<2x25xf32, #tpu.memory_space<vmem>>, vector<2x25xf32>
    %6 = vector.extract_strided_slice %4 {offsets = [0, 0], sizes = [8, 1], strides = [1, 1]} : vector<8x2xf32> to vector<8x1xf32>
    %7 = vector.extract_strided_slice %5 {offsets = [0, 0], sizes = [1, 25], strides = [1, 1]} : vector<2x25xf32> to vector<1x25xf32>
    %8 = vector.broadcast %6 : vector<8x1xf32> to vector<8x25xf32>
    %9 = vector.broadcast %7 : vector<1x25xf32> to vector<8x25xf32>
    %10 = arith.mulf %8, %9 : vector<8x25xf32>
    %11 = vector.extract_strided_slice %4 {offsets = [0, 1], sizes = [8, 1], strides = [1, 1]} : vector<8x2xf32> to vector<8x1xf32>
    %12 = vector.extract_strided_slice %5 {offsets = [1, 0], sizes = [1, 25], strides = [1, 1]} : vector<2x25xf32> to vector<1x25xf32>
    %13 = vector.broadcast %11 : vector<8x1xf32> to vector<8x25xf32>
    %14 = vector.broadcast %12 : vector<1x25xf32> to vector<8x25xf32>
    %15 = arith.mulf %13, %14 : vector<8x25xf32>
    %16 = arith.addf %10, %15 : vector<8x25xf32>
    %c0_6 = arith.constant 0 : index
    %c0_7 = arith.constant 0 : index
    %17 = vector.load %arg6[%c0_6, %c0_7] : memref<1x25xf32, #tpu.memory_space<vmem>>, vector<1x25xf32>
    %18 = vector.broadcast %17 : vector<1x25xf32> to vector<8x25xf32>
    %19 = arith.addf %16, %18 : vector<8x25xf32>
    %c0_8 = arith.constant 0 : index
    %c0_9 = arith.constant 0 : index
    %20 = vector.load %arg12[%c0_8, %c0_9] : memref<8x25xf32, #tpu.memory_space<vmem>>, vector<8x25xf32>
    tpu.vector_store %arg12[%c0_8, %c0_9], %19 {strides = array<i32>} : memref<8x25xf32, #tpu.memory_space<vmem>>, vector<8x25xf32>,
    %c0_10 = arith.constant 0 : index
    %c0_11 = arith.constant 0 : index
    %21 = vector.load %arg5[%c0_10, %c0_11] : memref<25x25xf32, #tpu.memory_space<vmem>>, vector<25x25xf32>
    %c0_12 = arith.constant 0 : index
    %c0_13 = arith.constant 0 : index
    %22 = vector.load %arg11[%c0_12, %c0_13] : memref<8x25xf32, #tpu.memory_space<vmem>>, vector<8x25xf32>
    %c0_i32_14 = arith.constant 0 : i32
    %c8_i32 = arith.constant 8 : i32
    %23 = arith.muli %c0_i32_14, %c8_i32 : i32
    %24 = tpu.assume_multiple %23, 8 : i32
    %25 = arith.index_cast %24 : i32 to index
    %c0_15 = arith.constant 0 : index
    %26 = vector.load %arg12[%25, %c0_15] : memref<8x25xf32, #tpu.memory_space<vmem>>, vector<8x25xf32>
    %cst = arith.constant dense<0.000000e+00> : vector<8x25xf32>
    %27 = tpu.matmul %22, %21, %cst {dimension_numbers = #tpu.dot_dimension_numbers<[1], [0], [0], [1], [0, 0, 1, 1], [], []>} : vector<8x25xf32>, vector<25x25xf32>, vector<8x25xf32> -> vector<8x25xf32>
    %28 = arith.addf %27, %26 : vector<8x25xf32>
    %29 = math.tanh %28 : vector<8x25xf32>
    %c1_i32 = arith.constant 1 : i32
    %c0_16 = arith.constant 0 : index
    %c0_17 = arith.constant 0 : index
    %30 = vector.load %arg11[%c0_16, %c0_17] : memref<8x25xf32, #tpu.memory_space<vmem>>, vector<8x25xf32>
    tpu.vector_store %arg11[%c0_16, %c0_17], %29 {strides = array<i32>} : memref<8x25xf32, #tpu.memory_space<vmem>>, vector<8x25xf32>,
    %c0_i32_18 = arith.constant 0 : i32
    %31 = arith.cmpi eq, %arg1, %c0_i32_18 : i32
    %32 = arith.extui %31 : i1 to i32
    %c0_i32_19 = arith.constant 0 : i32
    %33 = arith.cmpi ne, %32, %c0_i32_19 : i32
    scf.if %33 {
      %c0_20 = arith.constant 0 : index
      %c0_21 = arith.constant 0 : index
      %34 = vector.load %arg10[%c0_20, %c0_21] : memref<8x25xf32, #tpu.memory_space<vmem>>, vector<8x25xf32>
      tpu.vector_store %arg10[%c0_20, %c0_21], %29 {strides = array<i32>} : memref<8x25xf32, #tpu.memory_space<vmem>>, vector<8x25xf32>,
      %c0_22 = arith.constant 0 : index
      %c0_23 = arith.constant 0 : index
      %35 = vector.load %arg7[%c0_22, %c0_23] : memref<25x8xf32, #tpu.memory_space<vmem>>, vector<25x8xf32>
      %cst_24 = arith.constant dense<0.000000e+00> : vector<8x8xf32>
      %36 = tpu.matmul %29, %35, %cst_24 {dimension_numbers = #tpu.dot_dimension_numbers<[1], [0], [0], [1], [0, 0, 1, 1], [], []>} : vector<8x25xf32>, vector<25x8xf32>, vector<8x8xf32> -> vector<8x8xf32>
      %c0_25 = arith.constant 0 : index
      %c0_26 = arith.constant 0 : index
      %37 = vector.load %arg8[%c0_25, %c0_26] : memref<1x8xf32, #tpu.memory_space<vmem>>, vector<1x8xf32>
      %38 = vector.broadcast %37 : vector<1x8xf32> to vector<8x8xf32>
      %39 = arith.addf %36, %38 : vector<8x8xf32>
      %c0_27 = arith.constant 0 : index
      %c0_28 = arith.constant 0 : index
      %40 = vector.load %arg9[%c0_27, %c0_28] : memref<8x8xf32, #tpu.memory_space<vmem>>, vector<8x8xf32>
      tpu.vector_store %arg9[%c0_27, %c0_28], %39 {strides = array<i32>} : memref<8x8xf32, #tpu.memory_space<vmem>>, vector<8x8xf32>,
    } else {
    }
    return
  }
  func.func @transform_0(%arg0: i32, %arg1: i32) -> (i32, i32, i32, i32) {
    %c0_i32 = arith.constant 0 : i32
    %c0_i32_0 = arith.constant 0 : i32
    %c0_i32_1 = arith.constant 0 : i32
    return %arg0, %arg1, %c0_i32, %c0_i32_0 : i32, i32, i32, i32
  }
  func.func @transform_1(%arg0: i32, %arg1: i32) -> (i32, i32) {
    %c0_i32 = arith.constant 0 : i32
    %c0_i32_0 = arith.constant 0 : i32
    return %arg0, %c0_i32 : i32, i32
  }
  func.func @transform_2(%arg0: i32, %arg1: i32) -> (i32, i32) {
    %c0_i32 = arith.constant 0 : i32
    %c0_i32_0 = arith.constant 0 : i32
    %c0_i32_1 = arith.constant 0 : i32
    return %c0_i32, %c0_i32_0 : i32, i32
  }
  func.func @transform_3(%arg0: i32, %arg1: i32) -> (i32, i32) {
    %c0_i32 = arith.constant 0 : i32
    %c0_i32_0 = arith.constant 0 : i32
    %c0_i32_1 = arith.constant 0 : i32
    return %c0_i32, %c0_i32_0 : i32, i32
  }
  func.func @transform_4(%arg0: i32, %arg1: i32) -> (i32, i32) {
    %c0_i32 = arith.constant 0 : i32
    %c0_i32_0 = arith.constant 0 : i32
    %c0_i32_1 = arith.constant 0 : i32
    return %c0_i32, %c0_i32_0 : i32, i32
  }
  func.func @transform_5(%arg0: i32, %arg1: i32) -> (i32, i32) {
    %c0_i32 = arith.constant 0 : i32
    %c0_i32_0 = arith.constant 0 : i32
    %c0_i32_1 = arith.constant 0 : i32
    return %c0_i32, %c0_i32_0 : i32, i32
  }
  func.func @transform_6(%arg0: i32, %arg1: i32) -> (i32, i32) {
    %c0_i32 = arith.constant 0 : i32
    %c0_i32_0 = arith.constant 0 : i32
    %c0_i32_1 = arith.constant 0 : i32
    return %c0_i32, %c0_i32_0 : i32, i32
  }
  func.func @transform_7(%arg0: i32, %arg1: i32) -> (i32, i32) {
    %c0_i32 = arith.constant 0 : i32
    %c0_i32_0 = arith.constant 0 : i32
    return %arg0, %c0_i32 : i32, i32
  }
  func.func @transform_8(%arg0: i32, %arg1: i32) -> (i32, i32) {
    %c0_i32 = arith.constant 0 : i32
    %c0_i32_0 = arith.constant 0 : i32
    return %arg0, %c0_i32 : i32, i32
  }
}

</mosaic_0001>

<bundles_post_ra>
// kernel: tpu_custom_call.1
= control target key start
LH: loop header
LB: loop body
LE: loop exit
PB: predicated region body
PF: predicated region fallthrough
CT: control target
= control target key end

     0   :  { %14 = vsyncpa [#allocation5], 0  ;;  %vm78_vm0 = vcmask 1040384   ;;  %v387_v3 = vmov 0.0|0.0   ;;  %vm35_vm1 = vcmask 203776   ;;  %vm388_vm2 = vmmov 0   ;;  %s518_s0 = inlined_call_operand.vmem [shape: f32[1,1,8,2], index: 0, kind: input, shape index: {}]   ;;  %s519_s1 = inlined_call_operand.vmem [shape: f32[8,25], index: 1, kind: input, shape index: {}]   ;;  %s520_s2 = inlined_call_operand.vmem [shape: f32[2,25], index: 2, kind: input, shape index: {}]   ;;  %s521_s3 = inlined_call_operand.vmem [shape: f32[25,25], index: 3, kind: input, shape index: {}]   ;;  %s522_s4 = inlined_call_operand.vmem [shape: f32[1,25], index: 4, kind: input, shape index: {}]   ;;  %s523_s5 = inlined_call_operand.vmem [shape: f32[25,8], index: 5, kind: input, shape index: {}]   ;;  %s524_s6 = inlined_call_operand.vmem [shape: f32[1,8], index: 6, kind: input, shape index: {}]   ;;  %s525_s7 = inlined_call_operand.hbm [shape: f32[8,8], index: 7, kind: output, shape index: {0}]   ;;  %s526_s8 = inlined_call_operand.hbm [shape: f32[8,25], index: 8, kind: output, shape index: {1}]  }
   0x1   :  { %v69_v0 = vld [vmem:[%s521_s3] sm:$0xff]  ;;  %v70_v1 = vld [vmem:[%s521_s3 + $0x8] sm:$0xff]  ;;  %v71_v2 = vld [vmem:[%s521_s3 + $0x10] sm:$0xff]  ;;  %313 = vmatprep.subr.bf16.mxu0 %v387_v3  ;;  %320 = vmatprep.subr.bf16.mxu1 %v387_v3  ;;  %v389_v7 = vmov 0.0   ;;  %v390_v10 = vmov 0  }
   0x2   :  { %v314_v4 = vpack.c.bf16 %v70_v1, %v69_v0  ;;  %v72_v5 = vld [vmem:[%s521_s3 + $0x18] sm:$0x1]  ;;  %v34_v6 = vld [vmem:[%s519_s1] sm:$0xff]  ;;  %299 = vmatprep.mubr.msk.f32.mxu0 %vm388_vm2, %v389_v7  ;;  %310 = vmatprep.mubr.msk.f32.mxu1 %vm388_vm2, %v389_v7 }
   0x3   :  { %36 = vst.msk [vmem:[#allocation2] sm:$0xff] %vm35_vm1, %v34_v6  ;;  %v37_v8 = vld [vmem:[%s518_s0] sm:$0xff]  ;;  %v317_v9 = vpack.c.bf16 %v72_v5, %v71_v2  ;;  %335 = vset.pattern.permute.xlu0 %v390_v10 }
   0x4   :  { %315 = vmatpush3.bf16.msra.mxu0 %v314_v4 }
   0x5   :  { %15 = vsyncpa [#allocation7], 0  ;;  %316 = vmatprep.subr.bf16.mxu0 %v387_v3  ;;  %vm391_vm3 = vmmov 1   ;;  %41 = vperm.xlu0 %335, %v37_v8   ;;  %v392_v12 = vmov 1   ;;  %v158_v14 = vld [vmem:[%s523_s5] sm:$0xff]  ;;  %v159_v15 = vld [vmem:[%s523_s5 + $0x8] sm:$0xff]  ;;  %v44_v20 = vlaneseq }
   0x6   :  { %vm460_vm4 = vmpackc.low %vm78_vm0, %vm391_vm3  ;;  %v321_v16 = vpack.c.bf16 %v159_v15, %v158_v14  ;;  %v160_v17 = vld [vmem:[%s523_s5 + $0x10] sm:$0xff]  ;;  %v161_v18 = vld [vmem:[%s523_s5 + $0x18] sm:$0x1] }
   0x7   :  { %v324_v19 = vpack.c.bf16 %v161_v18, %v160_v17  ;;  %v45_v21 = vshrl.u32 %v44_v20, 7  ;;  %v38_v23 = vld [vmem:[%s520_s2] sm:$0x3]  ;;  %s393_s2 = smov [#allocation6]  }
   0x8   :  { %319 = vmatpush3.bf16.msk.msra.mxu0 %vm460_vm4, %v317_v9  ;;  %322 = vmatpush3.bf16.msra.mxu1 %v321_v16  ;;  %v275_v31 = vld [vmem:[%s522_s4] ss:$0 sm:$0xff]  ;;  %s263_s25 = sshll.u32 %s393_s2, 4  ;;  %s264_s25 = int_to_ptr.vmem [resolvable:$true] %s263_s25 }
   0x9   :  { %336 = vset.pattern.permute.xlu0 %v392_v12  ;;  %323 = vmatprep.subr.bf16.mxu1 %v387_v3  ;;  %v46_v22 = vsub.s32 0, %v45_v21  ;;  %v55_v24 = vsub.s32 1, %v45_v21  ;;  %s339_s4 = scalar_lea.vmem %s264_s25, 128  ;;  %p344_p1 = scmp.lt.s32.totalorder %s264_s25, %s264_s25 }
   0xa   :  { %v73_v13 = vld [vmem:[#allocation2] sm:$0xff]  ;;  %50 = vperm.xlu0 %336, %v37_v8   ;;  %p340_p0 = scmp.ne.s32.totalorder %s264_s25, %s339_s4  ;;  %p345_p2 = scmp.lt.s32.totalorder %s339_s4, %s339_s4 }
   0xb   :  { %300 = vmatmul.mubr.msk.f32.vlgmr.msra.gmra.mrb[0].mxu0 %vm35_vm1, %v73_v13  ;;  %v47_v25 = vrot.slane %v38_v23, %v46_v22  ;;  %v56_v27 = vrot.slane %v38_v23, %v55_v24 }
   0xc   :  { %326 = vmatpush3.bf16.msk.msra.mxu1 %vm460_vm4, %v324_v19  ;;  %p346_p3 = por %p345_p2, %p344_p1 }
   0xe   :  { %p347_p4 = pnand %p346_p3, %p340_p0 }
  0x84   :  { %v42_v26 = vpop.permute.xlu0 %41 }
  0x85   :  { %v48_v28 = vmul.f32 %v47_v25, %v42_v26 }
  0x89   :  { %v51_v29 = vpop.permute.xlu0 %50 }
  0x8a   :  { %v57_v30 = vmul.f32 %v56_v27, %v51_v29 }
  0x8c   :  { %v58_v32 = vadd.f32 %v57_v30, %v48_v28 }
  0x8e   :  { %v66_v33 = vadd.f32 %v275_v31, %v58_v32 }
  0x90   :  { %68 = vst.msk [vmem:[#allocation3] sm:$0xff] %vm35_vm1, %v66_v33 }
  0x97   :  { %v74_v34 = vld [vmem:[#allocation3] sm:$0xff] }
  0xde   :  { %v148_v35 = vpop.f32.mrb[0].mxu0 }
  0xdf   :  { %v149_v36 = vadd.f32 %v148_v35, %v74_v34  ;;  %v301_v37 = vpop.f32.mrb[1].mxu0 }
  0xe1   :  { %337 = vtanh.f32 %v149_v36 }
  0xeb   :  { %v338_v38 = vpop.eup %337 }
  0xec   :  { %153 = vst.msk [vmem:[#allocation2] sm:$0xff] %vm35_vm1, %v338_v38  ;;  %157 = vst.msk [vmem:[#allocation6] sm:$0xff] %vm35_vm1, %v338_v38  ;;  %311 = vmatmul.mubr.msk.f32.vlgmr.msra.gmra.mrb[0].mxu1 %vm35_vm1, %v338_v38 }
  0xed   :  { %350 = shalt.err (!%p347_p4)
}
  0xee   :  { %s351_s28 = scalar_lea.hbm %s526_s8, 128 }
  0xef   :  { %p352_p5 = scmp.ne.s32.totalorder %s526_s8, %s351_s28  ;;  %p355_p6 = scmp.lt.u32.totalorder %s351_s28, %s526_s8 }
  0xf1   :  { %p357_p7 = pnand %p355_p6, %p352_p5 }
  0xf3   :  { %360 = shalt.err (!%p357_p7)
}
  0xf4   :  { %266 = dma.vmem_to_hbm [thread:$0]  %s264_s25, 128, %s526_s8, [#allocation7]   ;;  %v278_v39 = vld [vmem:[%s524_s6] ss:$0 sm:$0xff]  ;;  %vm245_vm5 = vcmask 64512  }
  0xf5   :  { %s394_s15 = smov [#allocation4]  }
  0xf6   :  { %s253_s16 = sshll.u32 %s394_s15, 4  ;;  %s254_s16 = int_to_ptr.vmem [resolvable:$true] %s253_s16 }
  0xf7   :  { %s361_s0 = scalar_lea.vmem %s254_s16, 128  ;;  %p366_p9 = scmp.lt.s32.totalorder %s254_s16, %s254_s16 }
  0xf8   :  { %p362_p8 = scmp.ne.s32.totalorder %s254_s16, %s361_s0  ;;  %p367_p10 = scmp.lt.s32.totalorder %s361_s0, %s361_s0 }
  0xfa   :  { %p368_p11 = por %p367_p10, %p366_p9 }
  0xfc   :  { %p369_p12 = pnand %p368_p11, %p362_p8 }
 0x1bf   :  { %v241_v40 = vpop.f32.mrb[0].mxu1 }
 0x1c0   :  { %v242_v41 = vadd.f32 %v278_v39, %v241_v40  ;;  %v312_v42 = vpop.f32.mrb[1].mxu1 }
 0x1c2   :  { %246 = vst.msk [vmem:[#allocation4] sm:$0xff] %vm245_vm5, %v242_v41 }
 0x1c3   :  { %372 = shalt.err (!%p369_p12)
}
 0x1c4   :  { %s373_s3 = scalar_lea.hbm %s525_s7, 128 }
 0x1c5   :  { %p374_p13 = scmp.ne.s32.totalorder %s525_s7, %s373_s3  ;;  %p377_p0 = scmp.lt.u32.totalorder %s373_s3, %s525_s7 }
 0x1c7   :  { %p379_p1 = pnand %p377_p0, %p374_p13 }
 0x1c9   :  { %382 = shalt.err (!%p379_p1)
}
 0x1ca   :  { %256 = dma.vmem_to_hbm [thread:$0]  %s254_s16, 128, %s525_s7, [#allocation5]  }
 0x1cb   :  { %383 = dma.done.wait [#allocation5], 128  }
 0x1cc   :  { %384 = vsyncadd [#allocation5], 4294967168 }
 0x1cd   :  { %385 = dma.done.wait [#allocation7], 128  }
 0x1ce   :  { %386 = vsyncadd [#allocation7], 4294967168 }
 0x1cf   :  { %273 = vsyncpa [#allocation5], 1 }
 0x1d0   :  { %274 = vsyncpa [#allocation7], 1 }

</bundles_post_ra>
